<compile_context>
chip_gen: v6e
topology: v6e:2x2x1
jax: 0.10.0
libtpu: 0.0.40
codegen_flags: <defaults>
</compile_context>

<pallas_src>
import functools

import jax
import jax.numpy as jnp
from jax.experimental import pallas as pl
from jax.experimental.pallas import tpu as pltpu


_SUBLANE = 8       # f32 sublane tile height
_LANE = 128        # lane tile width
_NEG_BIG = -1e30   # masks padded logit columns out of the log-softmax (f32!)


def _round_up(n, m):
    return ((n + m - 1) // m) * m


# ----------------------------- Pallas kernel ------------------------------- #

def make_fused_mlp_kernel(num_layers):
    """Fused classifier kernel: (Linear+ReLU)*(L-1) -> Linear -> LogSoftmax.

    refs = (x, w0, b0, w1, b1, ..., w_{L-1}, b_{L-1}, out). Everything is a
    full-array VMEM block; activations never leave VMEM. The f32 input tile is
    cast to bf16 in-kernel; matmuls run on the MXU as bf16 x bf16 with f32
    accumulation; bias add / ReLU / log-softmax run in f32 (VPU/XLU/EUP).
    """
    def kernel(*refs):
        x_ref = refs[0]
        o_ref = refs[-1]
        wb = refs[1:-1]

        # f32 (8,128)-aligned input -> bf16 on the VPU right before the MXU.
        h = x_ref[...].astype(jnp.bfloat16)              # [Bp, Fin_p]
        for li in range(num_layers - 1):
            w = wb[2 * li][...]                          # bf16 [din_p, dout_p]
            b = wb[2 * li + 1][...]                      # f32  [1, dout_p]
            y = jnp.dot(h, w, preferred_element_type=jnp.float32) + b
            h = jnp.maximum(y, 0.0).astype(w.dtype)      # ReLU; Dropout = identity (eval)

        w = wb[-2][...]
        b = wb[-1][...]                                  # padded cols hold -1e30
        y = jnp.dot(h, w, preferred_element_type=jnp.float32) + b
        m = jnp.max(y, axis=-1, keepdims=True)           # XLU
        z = y - m
        lse = jnp.log(jnp.sum(jnp.exp(z), axis=-1, keepdims=True))  # EUP + XLU
        o_ref[...] = z - lse                             # log-probabilities

    return kernel


# --------------------------- parameter construction ------------------------ #

def init_classifier_params(key, no_model_inputs, layers_input_sizes,
                           no_model_outputs):
    """Deterministic init matching nn.Linear default: U(-1/sqrt(fan_in), 1/sqrt(fan_in)).

    Weights are stored as [in, out] (PyTorch stores [out, in] and does x @ W.T).
    """
    dims = [no_model_inputs] + list(layers_input_sizes) + [no_model_outputs]
    params = []
    for i in range(len(dims) - 1):
        key, wk, bk = jax.random.split(key, 3)
        bound = 1.0 / float(dims[i]) ** 0.5
        w = jax.random.uniform(wk, (dims[i], dims[i + 1]), jnp.float32,
                               minval=-bound, maxval=bound)
        b = jax.random.uniform(bk, (1, dims[i + 1]), jnp.float32,
                               minval=-bound, maxval=bound)
        params.append((w, b))
    return params


def prepare_params(params):
    """ONE-TIME padding/cast of classifier params to the TPU kernel layout.

    Runs eagerly (outside jit) so the padded bf16 weights / f32 biases are
    materialized in HBM once and simply passed into every forward call.
    Hidden-layer pad columns get 0 bias (ReLU(0)=0, then killed by the next
    layer's zero weight rows); head pad columns get a -1e30 f32 bias so exp()
    underflows to exactly 0 and the log-softmax normalizer is unchanged.
    """
    num_layers = len(params)
    flat = []
    for li, (w, b) in enumerate(params):
        din, dout = w.shape
        dpi, dpo = _round_up(din, _LANE), _round_up(dout, _LANE)
        w_p = jnp.zeros((dpi, dpo), jnp.bfloat16).at[:din, :dout].set(
            w.astype(jnp.bfloat16))
        pad_fill = 0.0 if li < num_layers - 1 else _NEG_BIG
        b_p = jnp.full((1, dpo), pad_fill, jnp.float32).at[:, :dout].set(
            b.reshape(1, dout).astype(jnp.float32))
        flat += [w_p, b_p]
    return tuple(jax.device_put(a) for a in flat)


# -------------------------------- forward ---------------------------------- #

@functools.partial(jax.jit, static_argnames=("fout",))
def network_forward(x_nchw, padded_params, fout):
    """Forward pass (eval mode). Returns log-probabilities [B, fout].

    `padded_params` must come from prepare_params(); no per-call weight
    padding/casting happens here.
    """
    B = x_nchw.shape[0]
    feats = x_nchw.reshape(B, -1).astype(jnp.float32)
    fin = feats.shape[1]
    num_layers = len(padded_params) // 2
    fin_p = padded_params[0].shape[0]
    head_p = padded_params[-2].shape[1]

    # Pad only the batch (f32 sublane tile = 8); feature dim is already
    # lane-padded by construction of the weights' input dim.
    bp = _round_up(max(B, _SUBLANE), _SUBLANE)
    x_p = jnp.zeros((bp, fin_p), jnp.float32).at[:B, :fin].set(feats)

    flat_inputs = [x_p, *padded_params]

    # Advisory cost estimate: this call is tiny and latency-bound; tell XLA so.
    flops = 0
    bytes_accessed = x_p.size * 4 + bp * head_p * 4
    for li in range(num_layers):
        w_p = padded_params[2 * li]
        b_p = padded_params[2 * li + 1]
        flops += 2 * bp * w_p.shape[0] * w_p.shape[1]
        bytes_accessed += w_p.size * 2 + b_p.size * 4
    transcendentals = bp * head_p + bp  # exp per logit + log per row

    out_p = pl.pallas_call(
        make_fused_mlp_kernel(num_layers),
        out_shape=jax.ShapeDtypeStruct((bp, head_p), jnp.float32),
        in_specs=[pl.BlockSpec(memory_space=pltpu.MemorySpace.VMEM)]
        * len(flat_inputs),
        out_specs=pl.BlockSpec(memory_space=pltpu.MemorySpace.VMEM),
        cost_estimate=pl.CostEstimate(
            flops=int(flops),
            transcendentals=int(transcendentals),
            bytes_accessed=int(bytes_accessed)),
    )(*flat_inputs)

    return out_p[:B, :fout]


# ------------------------------ reference checks ---------------------------- #

def _reference_forward_bf16(x_nchw, params):
    """Mirrors the kernel's numerics: bf16 operands, f32 accumulate."""
    B = x_nchw.shape[0]
    h = x_nchw.reshape(B, -1).astype(jnp.bfloat16)
    for (w, b) in params[:-1]:
        y = jnp.dot(h, w.astype(jnp.bfloat16),
                    preferred_element_type=jnp.float32) + b
        h = jnp.maximum(y, 0.0).astype(jnp.bfloat16)
    w, b = params[-1]
    y = jnp.dot(h, w.astype(jnp.bfloat16), preferred_element_type=jnp.float32) + b
    return jax.nn.log_softmax(y, axis=1)


def _reference_forward_f32(x_nchw, params):
    """Full-f32 semantics of the original PyTorch classifier (loose check)."""
    B = x_nchw.shape[0]
    h = x_nchw.reshape(B, -1).astype(jnp.float32)
    for (w, b) in params[:-1]:
        h = jnp.maximum(h @ w + b, 0.0)
    w, b = params[-1]
    return jax.nn.log_softmax(h @ w + b, axis=1)


if __name__ == "__main__":
    # Small shapes consistent with the module's forward:
    #   image input x: [B, C, H, W] = [2, 4, 16, 16]
    #   no_model_inputs = 4*16*16 = 1024, layers_input_sizes = [256, 128],
    #   no_model_outputs = 32
    key = jax.random.PRNGKey(0)
    k_x, k_p = jax.random.split(key)

    x = jax.random.normal(k_x, (2, 4, 16, 16), dtype=jnp.float32)
    params = init_classifier_params(
        k_p,
        no_model_inputs=4 * 16 * 16,
        layers_input_sizes=[256, 128],
        no_model_outputs=32,
    )
    no_model_outputs = params[-1][0].shape[1]

    # One-time TPU-layout preparation of the classifier weights.
    padded_params = prepare_params(params)

    out = network_forward(x, padded_params, fout=no_model_outputs)
    out = jax.block_until_ready(out)

    assert out.shape == (2, 32), out.shape

    ref_bf16 = _reference_forward_bf16(x, params)
    assert jnp.allclose(out, ref_bf16, atol=1e-4, rtol=1e-4), \
        "mismatch vs bf16-mirrored reference"

    ref_f32 = _reference_forward_f32(x, params)
    assert jnp.allclose(out, ref_f32, atol=1e-1, rtol=0.0), \
        "mismatch vs f32 module semantics (loose check)"

    print("KERNEL_OK")
</pallas_src>

<mosaic_0001>
module attributes {stable_mosaic.version = 11 : i64} {
  func.func @kernel(%arg0: memref<8x1024xf32, #tpu.memory_space<vmem>>, %arg1: memref<1024x256xbf16, #tpu.memory_space<vmem>>, %arg2: memref<1x256xf32, #tpu.memory_space<vmem>>, %arg3: memref<256x128xbf16, #tpu.memory_space<vmem>>, %arg4: memref<1x128xf32, #tpu.memory_space<vmem>>, %arg5: memref<128x128xbf16, #tpu.memory_space<vmem>>, %arg6: memref<1x128xf32, #tpu.memory_space<vmem>>, %arg7: memref<8x128xf32, #tpu.memory_space<vmem>>) attributes {dimension_semantics = [], scalar_prefetch = 0 : i64, scratch_operands = 0 : i64, tpu.core_type = #tpu.core_type<tc>} {
    %c0 = arith.constant 0 : index
    %c0_0 = arith.constant 0 : index
    %0 = vector.load %arg0[%c0, %c0_0] : memref<8x1024xf32, #tpu.memory_space<vmem>>, vector<8x1024xf32>
    %1 = arith.truncf %0 : vector<8x1024xf32> to vector<8x1024xbf16>
    %c0_1 = arith.constant 0 : index
    %c0_2 = arith.constant 0 : index
    %2 = vector.load %arg1[%c0_1, %c0_2] : memref<1024x256xbf16, #tpu.memory_space<vmem>>, vector<1024x256xbf16>
    %c0_3 = arith.constant 0 : index
    %c0_4 = arith.constant 0 : index
    %3 = vector.load %arg2[%c0_3, %c0_4] : memref<1x256xf32, #tpu.memory_space<vmem>>, vector<1x256xf32>
    %cst = arith.constant dense<0.000000e+00> : vector<8x256xf32>
    %4 = tpu.matmul %1, %2, %cst {dimension_numbers = #tpu.dot_dimension_numbers<[1], [0], [0], [1], [0, 0, 1, 1], [], []>} : vector<8x1024xbf16>, vector<1024x256xbf16>, vector<8x256xf32> -> vector<8x256xf32>
    %5 = vector.broadcast %3 : vector<1x256xf32> to vector<8x256xf32>
    %6 = arith.addf %4, %5 : vector<8x256xf32>
    %cst_5 = arith.constant 0.000000e+00 : f32
    %7 = vector.broadcast %cst_5 : f32 to vector<8x256xf32>
    %8 = arith.maximumf %6, %7 : vector<8x256xf32>
    %9 = arith.truncf %8 : vector<8x256xf32> to vector<8x256xbf16>
    %c0_6 = arith.constant 0 : index
    %c0_7 = arith.constant 0 : index
    %10 = vector.load %arg3[%c0_6, %c0_7] : memref<256x128xbf16, #tpu.memory_space<vmem>>, vector<256x128xbf16>
    %c0_8 = arith.constant 0 : index
    %c0_9 = arith.constant 0 : index
    %11 = vector.load %arg4[%c0_8, %c0_9] : memref<1x128xf32, #tpu.memory_space<vmem>>, vector<1x128xf32>
    %cst_10 = arith.constant dense<0.000000e+00> : vector<8x128xf32>
    %12 = tpu.matmul %9, %10, %cst_10 {dimension_numbers = #tpu.dot_dimension_numbers<[1], [0], [0], [1], [0, 0, 1, 1], [], []>} : vector<8x256xbf16>, vector<256x128xbf16>, vector<8x128xf32> -> vector<8x128xf32>
    %13 = vector.broadcast %11 : vector<1x128xf32> to vector<8x128xf32>
    %14 = arith.addf %12, %13 : vector<8x128xf32>
    %cst_11 = arith.constant 0.000000e+00 : f32
    %15 = vector.broadcast %cst_11 : f32 to vector<8x128xf32>
    %16 = arith.maximumf %14, %15 : vector<8x128xf32>
    %17 = arith.truncf %16 : vector<8x128xf32> to vector<8x128xbf16>
    %c0_12 = arith.constant 0 : index
    %c0_13 = arith.constant 0 : index
    %18 = vector.load %arg5[%c0_12, %c0_13] : memref<128x128xbf16, #tpu.memory_space<vmem>>, vector<128x128xbf16>
    %c0_14 = arith.constant 0 : index
    %c0_15 = arith.constant 0 : index
    %19 = vector.load %arg6[%c0_14, %c0_15] : memref<1x128xf32, #tpu.memory_space<vmem>>, vector<1x128xf32>
    %cst_16 = arith.constant dense<0.000000e+00> : vector<8x128xf32>
    %20 = tpu.matmul %17, %18, %cst_16 {dimension_numbers = #tpu.dot_dimension_numbers<[1], [0], [0], [1], [0, 0, 1, 1], [], []>} : vector<8x128xbf16>, vector<128x128xbf16>, vector<8x128xf32> -> vector<8x128xf32>
    %21 = vector.broadcast %19 : vector<1x128xf32> to vector<8x128xf32>
    %22 = arith.addf %20, %21 : vector<8x128xf32>
    %cst_17 = arith.constant dense<0xFF800000> : vector<8xf32>
    %23 = vector.multi_reduction <maximumf>, %22, %cst_17 [1] : vector<8x128xf32> to vector<8xf32>
    %24 = vector.shape_cast %23 : vector<8xf32> to vector<8x1xf32>
    %25 = vector.broadcast %24 : vector<8x1xf32> to vector<8x128xf32>
    %26 = arith.subf %22, %25 : vector<8x128xf32>
    %27 = math.exp %26 : vector<8x128xf32>
    %cst_18 = arith.constant dense<0.000000e+00> : vector<8xf32>
    %28 = vector.multi_reduction <add>, %27, %cst_18 [1] : vector<8x128xf32> to vector<8xf32>
    %29 = vector.shape_cast %28 : vector<8xf32> to vector<8x1xf32>
    %30 = math.log %29 : vector<8x1xf32>
    %31 = vector.broadcast %30 : vector<8x1xf32> to vector<8x128xf32>
    %32 = arith.subf %26, %31 : vector<8x128xf32>
    %c0_19 = arith.constant 0 : index
    %c0_20 = arith.constant 0 : index
    %33 = vector.load %arg7[%c0_19, %c0_20] : memref<8x128xf32, #tpu.memory_space<vmem>>, vector<8x128xf32>
    tpu.vector_store %arg7[%c0_19, %c0_20], %32 {strides = array<i32>} : memref<8x128xf32, #tpu.memory_space<vmem>>, vector<8x128xf32>,
    return
  }
}

</mosaic_0001>

<bundles_post_ra>
// kernel: network_forward.1
= control target key start
LH: loop header
LB: loop body
LE: loop exit
PB: predicated region body
PF: predicated region fallthrough
CT: control target
= control target key end

     0   :  { %12 = vsyncpa [#allocation3], 0  ;;  %s1761_s24 = smov [#allocation2]   ;;  %s1917_s0 = inlined_call_operand.vmem [shape: f32[8,1024], index: 0, kind: input, shape index: {}]   ;;  %s1918_s1 = inlined_call_operand.hbm [shape: bf16[1024,256], index: 1, kind: input, shape index: {}]   ;;  %s1919_s2 = inlined_call_operand.vmem [shape: f32[1,256], index: 2, kind: input, shape index: {}]   ;;  %s1920_s3 = inlined_call_operand.vmem [shape: bf16[256,128], index: 3, kind: input, shape index: {}]   ;;  %s1921_s4 = inlined_call_operand.vmem [shape: f32[1,128], index: 4, kind: input, shape index: {}]   ;;  %s1922_s5 = inlined_call_operand.vmem [shape: bf16[128,128], index: 5, kind: input, shape index: {}]   ;;  %s1923_s6 = inlined_call_operand.vmem [shape: f32[1,128], index: 6, kind: input, shape index: {}]   ;;  %s1924_s7 = inlined_call_operand.vmem [shape: f32[8,128], index: 7, kind: output, shape index: {}]  }
   0x1   :  { %s20_s25 = sshll.u32 %s1761_s24, 4  ;;  %s21_s25 = int_to_ptr.vmem [resolvable:$true] %s20_s25 }
   0x2   :  { %s1747_s26 = scalar_lea.vmem %s21_s25, 16384  ;;  %p1752_p1 = scmp.lt.s32.totalorder %s21_s25, %s21_s25 }
   0x3   :  { %p1748_p0 = scmp.ne.s32.totalorder %s21_s25, %s1747_s26  ;;  %p1753_p2 = scmp.lt.s32.totalorder %s1747_s26, %s1747_s26 }
   0x5   :  { %p1754_p3 = por %p1753_p2, %p1752_p1 }
   0x7   :  { %p1755_p4 = pnand %p1754_p3, %p1748_p0 }
   0x9   :  { %1758 = shalt.err (!%p1755_p4)
}
   0xa   :  { %s1762_s27 = smov 128   ;;  %s1763_s28 = smov 8  }
   0xb   :  { %26 = dma.hbm_to_vmem [thread:$0]  %s1918_s1, 16384, %s21_s25, [#allocation3], %s1762_s27, %s1762_s27, %s1763_s28  }
   0xc   :  { %1759 = dma.done.wait [#allocation3], 16384  }
   0xd   :  { %1760 = vsyncadd [#allocation3], 4294950912  ;;  %v1519_v0 = vld [vmem:[#allocation2 + $0x74] ss:$8 sps:$4 sm:$0xff]   ;;  %v1523_v2 = vld [vmem:[#allocation2 + $0x70] ss:$8 sps:$4 sm:$0xff]  }
   0xe   :  { %v1521_v1 = vld [vmem:[#allocation2 + $0x174] ss:$8 sps:$4 sm:$0xff]   ;;  %837 = vmatprep.subr.bf16.mxu0 %v1519_v0  ;;  %v1524_v3 = vld [vmem:[#allocation2 + $0x170] ss:$8 sps:$4 sm:$0xff]   ;;  %v1525_v4 = vld [vmem:[#allocation2 + $0x64] ss:$8 sps:$4 sm:$0xff]  }
   0xf   :  { %878 = vmatprep.subr.bf16.mxu1 %v1521_v1  ;;  %838 = vmatpush1.bf16.msra.mxu0 %v1523_v2  ;;  %v1527_v5 = vld [vmem:[#allocation2 + $0x164] ss:$8 sps:$4 sm:$0xff]   ;;  %v1529_v6 = vld [vmem:[#allocation2 + $0x60] ss:$8 sps:$4 sm:$0xff]   ;;  %v1531_v8 = vld [vmem:[#allocation2 + $0x54] ss:$8 sps:$4 sm:$0xff]  }
  0x10   :  { %879 = vmatpush1.bf16.msra.mxu1 %v1524_v3  ;;  %839 = vmatprep.subr.bf16.mxu0 %v1525_v4  ;;  %v1530_v7 = vld [vmem:[#allocation2 + $0x160] ss:$8 sps:$4 sm:$0xff]   ;;  %v1533_v9 = vld [vmem:[#allocation2 + $0x154] ss:$8 sps:$4 sm:$0xff]   ;;  %v1535_v10 = vld [vmem:[#allocation2 + $0x50] ss:$8 sps:$4 sm:$0xff]  }
  0x11   :  { %880 = vmatprep.subr.bf16.mxu1 %v1527_v5  ;;  %v1536_v11 = vld [vmem:[#allocation2 + $0x150] ss:$8 sps:$4 sm:$0xff]   ;;  %v1537_v12 = vld [vmem:[#allocation2 + $0x44] ss:$8 sps:$4 sm:$0xff]   ;;  %v1541_v14 = vld [vmem:[#allocation2 + $0x40] ss:$8 sps:$4 sm:$0xff]  }
  0x12   :  { %v1539_v13 = vld [vmem:[#allocation2 + $0x144] ss:$8 sps:$4 sm:$0xff]   ;;  %v1542_v15 = vld [vmem:[#allocation2 + $0x140] ss:$8 sps:$4 sm:$0xff]   ;;  %v1543_v16 = vld [vmem:[#allocation2 + $0x34] ss:$8 sps:$4 sm:$0xff]  }
  0x13   :  { %840 = vmatpush1.bf16.msra.mxu0 %v1529_v6  ;;  %v1545_v17 = vld [vmem:[#allocation2 + $0x134] ss:$8 sps:$4 sm:$0xff]   ;;  %v1547_v18 = vld [vmem:[#allocation2 + $0x30] ss:$8 sps:$4 sm:$0xff]   ;;  %v1549_v20 = vld [vmem:[#allocation2 + $0x24] ss:$8 sps:$4 sm:$0xff]  }
  0x14   :  { %881 = vmatpush1.bf16.msra.mxu1 %v1530_v7  ;;  %841 = vmatprep.subr.bf16.mxu0 %v1531_v8  ;;  %v1548_v19 = vld [vmem:[#allocation2 + $0x130] ss:$8 sps:$4 sm:$0xff]   ;;  %v1551_v21 = vld [vmem:[#allocation2 + $0x124] ss:$8 sps:$4 sm:$0xff]   ;;  %v1553_v22 = vld [vmem:[#allocation2 + $0x20] ss:$8 sps:$4 sm:$0xff]  }
  0x15   :  { %882 = vmatprep.subr.bf16.mxu1 %v1533_v9  ;;  %v1554_v23 = vld [vmem:[#allocation2 + $0x120] ss:$8 sps:$4 sm:$0xff]   ;;  %v1555_v24 = vld [vmem:[#allocation2 + $0x14] ss:$8 sps:$4 sm:$0xff]   ;;  %v1559_v26 = vld [vmem:[#allocation2 + $0x10] ss:$8 sps:$4 sm:$0xff]  }
  0x16   :  { %v1557_v25 = vld [vmem:[#allocation2 + $0x114] ss:$8 sps:$4 sm:$0xff]   ;;  %v1560_v27 = vld [vmem:[#allocation2 + $0x110] ss:$8 sps:$4 sm:$0xff]   ;;  %v1561_v28 = vld [vmem:[#allocation2 + $0x4] ss:$8 sps:$4 sm:$0xff]  }
  0x17   :  { %842 = vmatpush1.bf16.msra.mxu0 %v1535_v10  ;;  %v1563_v29 = vld [vmem:[#allocation2 + $0x104] ss:$8 sps:$4 sm:$0xff]   ;;  %v1565_v30 = vld [vmem:[#allocation2] ss:$8 sps:$4 sm:$0xff]   ;;  %v1567_v32 = vld [vmem:[#allocation2 + $0xf4] ss:$8 sps:$4 sm:$0xff]  }
  0x18   :  { %883 = vmatpush1.bf16.msra.mxu1 %v1536_v11  ;;  %843 = vmatprep.subr.bf16.mxu0 %v1537_v12  ;;  %v1566_v31 = vld [vmem:[#allocation2 + $0x100] ss:$8 sps:$4 sm:$0xff]   ;;  %v1569_v33 = vld [vmem:[#allocation2 + $0x1f4] ss:$8 sps:$4 sm:$0xff]   ;;  %v1571_v34 = vld [vmem:[#allocation2 + $0xf0] ss:$8 sps:$4 sm:$0xff]  }
  0x19   :  { %884 = vmatprep.subr.bf16.mxu1 %v1539_v13  ;;  %v1572_v35 = vld [vmem:[#allocation2 + $0x1f0] ss:$8 sps:$4 sm:$0xff]   ;;  %v1573_v36 = vld [vmem:[#allocation2 + $0xe4] ss:$8 sps:$4 sm:$0xff]   ;;  %v1577_v38 = vld [vmem:[#allocation2 + $0xe0] ss:$8 sps:$4 sm:$0xff]  }
  0x1a   :  { %v1575_v37 = vld [vmem:[#allocation2 + $0x1e4] ss:$8 sps:$4 sm:$0xff]   ;;  %v1578_v39 = vld [vmem:[#allocation2 + $0x1e0] ss:$8 sps:$4 sm:$0xff]   ;;  %v1579_v40 = vld [vmem:[#allocation2 + $0xd4] ss:$8 sps:$4 sm:$0xff]  }
  0x1b   :  { %844 = vmatpush1.bf16.msra.mxu0 %v1541_v14  ;;  %v1581_v41 = vld [vmem:[#allocation2 + $0x1d4] ss:$8 sps:$4 sm:$0xff]   ;;  %v1583_v42 = vld [vmem:[#allocation2 + $0xd0] ss:$8 sps:$4 sm:$0xff]   ;;  %v1585_v44 = vld [vmem:[#allocation2 + $0xc4] ss:$8 sps:$4 sm:$0xff]  }
  0x1c   :  { %885 = vmatpush1.bf16.msra.mxu1 %v1542_v15  ;;  %845 = vmatprep.subr.bf16.mxu0 %v1543_v16  ;;  %v1584_v43 = vld [vmem:[#allocation2 + $0x1d0] ss:$8 sps:$4 sm:$0xff]   ;;  %v1587_v45 = vld [vmem:[#allocation2 + $0x1c4] ss:$8 sps:$4 sm:$0xff]   ;;  %v1589_v47 = vld [vmem:[#allocation2 + $0xc0] ss:$8 sps:$4 sm:$0xff]  }
  0x1d   :  { %886 = vmatprep.subr.bf16.mxu1 %v1545_v17  ;;  %v42_v46 = vld [vmem:[%s1917_s0 + $0x8] sm:$0xff]  ;;  %v44_v50 = vld [vmem:[%s1917_s0 + $0x18] sm:$0xff]  ;;  %v41_v4 = vld [vmem:[%s1917_s0] sm:$0xff]  ;;  %vm1765_vm0 = vmmov 0  }
  0x1e   :  { %v1590_v48 = vld [vmem:[#allocation2 + $0x1c0] ss:$8 sps:$4 sm:$0xff]   ;;  %v50_v49 = vpack.c.bf16 %v42_v46, %v42_v46  ;;  %v1591_v51 = vld [vmem:[#allocation2 + $0xb4] ss:$8 sps:$4 sm:$0xff]   ;;  %v52_v52 = vpack.c.bf16 %v44_v50, %v44_v50  ;;  %v1595_v54 = vld [vmem:[#allocation2 + $0xb0] ss:$8 sps:$4 sm:$0xff]   ;;  %v49_v8 = vpack.c.bf16 %v41_v4, %v41_v4 }
  0x1f   :  { %846 = vmatpush1.bf16.msra.mxu0 %v1547_v18  ;;  %v1593_v53 = vld [vmem:[#allocation2 + $0x1b4] ss:$8 sps:$4 sm:$0xff]   ;;  %v1596_v55 = vld [vmem:[#allocation2 + $0x1b0] ss:$8 sps:$4 sm:$0xff]   ;;  %v1597_v56 = vld [vmem:[#allocation2 + $0xa4] ss:$8 sps:$4 sm:$0xff]  }
  0x20   :  { %887 = vmatpush1.bf16.msra.mxu1 %v1548_v19  ;;  %847 = vmatprep.subr.bf16.mxu0 %v1549_v20  ;;  %v1599_v57 = vld [vmem:[#allocation2 + $0x1a4] ss:$8 sps:$4 sm:$0xff]   ;;  %v1601_v58 = vld [vmem:[#allocation2 + $0xa0] ss:$8 sps:$4 sm:$0xff]   ;;  %v1603_v60 = vld [vmem:[#allocation2 + $0x94] ss:$8 sps:$4 sm:$0xff]  }
  0x21   :  { %888 = vmatprep.subr.bf16.mxu1 %v1551_v21  ;;  %869 = vmatprep.mubr.bf16.mxu0 %v50_v49  ;;  %v1602_v59 = vld [vmem:[#allocation2 + $0x1a0] ss:$8 sps:$4 sm:$0xff]   ;;  %v1605_v61 = vld [vmem:[#allocation2 + $0x194] ss:$8 sps:$4 sm:$0xff]   ;;  %v1607_v62 = vld [vmem:[#allocation2 + $0x90] ss:$8 sps:$4 sm:$0xff]  }
  0x22   :  { %910 = vmatprep.mubr.bf16.mxu1 %v52_v52  ;;  %v1608_v63 = vld [vmem:[#allocation2 + $0x190] ss:$8 sps:$4 sm:$0xff]   ;;  %v1609_v0 = vld [vmem:[#allocation2 + $0x84] ss:$8 sps:$4 sm:$0xff]   ;;  %v1613_v2 = vld [vmem:[#allocation2 + $0x80] ss:$8 sps:$4 sm:$0xff]  }
  0x23   :  { %848 = vmatpush1.bf16.msra.mxu0 %v1553_v22  ;;  %v1611_v1 = vld [vmem:[#allocation2 + $0x184] ss:$8 sps:$4 sm:$0xff]   ;;  %v1614_v3 = vld [vmem:[#allocation2 + $0x180] ss:$8 sps:$4 sm:$0xff]   ;;  %v43_v5 = vld [vmem:[%s1917_s0 + $0x10] sm:$0xff] }
  0x24   :  { %889 = vmatpush1.bf16.msra.mxu1 %v1554_v23  ;;  %849 = vmatprep.subr.bf16.mxu0 %v1555_v24  ;;  %v1617_v6 = vld [vmem:[#allocation2 + $0x274] ss:$8 sps:$4 sm:$0xff]   ;;  %v51_v9 = vpack.c.bf16 %v43_v5, %v43_v5  ;;  %v1615_v10 = vld [vmem:[#allocation2 + $0x270] ss:$8 sps:$4 sm:$0xff]   ;;  %v1623_v12 = vld [vmem:[#allocation2 + $0x264] ss:$8 sps:$4 sm:$0xff]  }
  0x25   :  { %890 = vmatprep.subr.bf16.mxu1 %v1557_v25  ;;  %v1620_v7 = vld [vmem:[#allocation2 + $0x374] ss:$8 sps:$4 sm:$0xff]   ;;  %v1618_v11 = vld [vmem:[#allocation2 + $0x370] ss:$8 sps:$4 sm:$0xff]   ;;  %v1626_v13 = vld [vmem:[#allocation2 + $0x364] ss:$8 sps:$4 sm:$0xff]  }
  0x26   :  { %v1621_v14 = vld [vmem:[#allocation2 + $0x260] ss:$8 sps:$4 sm:$0xff]   ;;  %v1629_v16 = vld [vmem:[#allocation2 + $0x254] ss:$8 sps:$4 sm:$0xff]   ;;  %v1627_v18 = vld [vmem:[#allocation2 + $0x250] ss:$8 sps:$4 sm:$0xff]  }
  0x27   :  { %850 = vmatpush1.bf16.msra.mxu0 %v1559_v26  ;;  %v1624_v15 = vld [vmem:[#allocation2 + $0x360] ss:$8 sps:$4 sm:$0xff]   ;;  %v1632_v17 = vld [vmem:[#allocation2 + $0x354] ss:$8 sps:$4 sm:$0xff]   ;;  %v1630_v19 = vld [vmem:[#allocation2 + $0x350] ss:$8 sps:$4 sm:$0xff]  }
  0x28   :  { %891 = vmatpush1.bf16.msra.mxu1 %v1560_v27  ;;  %851 = vmatprep.subr.bf16.mxu0 %v1561_v28  ;;  %v1635_v20 = vld [vmem:[#allocation2 + $0x244] ss:$8 sps:$4 sm:$0xff]   ;;  %v1633_v22 = vld [vmem:[#allocation2 + $0x240] ss:$8 sps:$4 sm:$0xff]   ;;  %v1641_v24 = vld [vmem:[#allocation2 + $0x234] ss:$8 sps:$4 sm:$0xff]  }
  0x29   :  { %892 = vmatprep.subr.bf16.mxu1 %v1563_v29  ;;  %v1638_v21 = vld [vmem:[#allocation2 + $0x344] ss:$8 sps:$4 sm:$0xff]   ;;  %v1636_v23 = vld [vmem:[#allocation2 + $0x340] ss:$8 sps:$4 sm:$0xff]   ;;  %v1644_v25 = vld [vmem:[#allocation2 + $0x334] ss:$8 sps:$4 sm:$0xff]  }
  0x2a   :  { %v1639_v26 = vld [vmem:[#allocation2 + $0x230] ss:$8 sps:$4 sm:$0xff]   ;;  %v1647_v28 = vld [vmem:[#allocation2 + $0x224] ss:$8 sps:$4 sm:$0xff]   ;;  %v1669_v50 = vld [vmem:[#allocation2 + $0x2e0] ss:$8 sps:$4 sm:$0xff]  }
  0x2b   :  { %852 = vmatpush1.bf16.msra.mxu0 %v1565_v30  ;;  %v1642_v27 = vld [vmem:[#allocation2 + $0x330] ss:$8 sps:$4 sm:$0xff]   ;;  %v1650_v29 = vld [vmem:[#allocation2 + $0x324] ss:$8 sps:$4 sm:$0xff]   ;;  %v1645_v30 = vld [vmem:[#allocation2 + $0x220] ss:$8 sps:$4 sm:$0xff]  }
  0x2c   :  { %893 = vmatpush1.bf16.msra.mxu1 %v1566_v31  ;;  %853 = vmatprep.subr.bf16.mxu0 %v1567_v32  ;;  %v1648_v31 = vld [vmem:[#allocation2 + $0x320] ss:$8 sps:$4 sm:$0xff]   ;;  %v1653_v32 = vld [vmem:[#allocation2 + $0x214] ss:$8 sps:$4 sm:$0xff]   ;;  %v1663_v46 = vld [vmem:[#allocation2 + $0x2f0] ss:$8 sps:$4 sm:$0xff]  }
  0x2d   :  { %894 = vmatprep.subr.bf16.mxu1 %v1569_v33  ;;  %v1656_v33 = vld [vmem:[#allocation2 + $0x314] ss:$8 sps:$4 sm:$0xff]   ;;  %v1674_v49 = vld [vmem:[#allocation2 + $0x3e4] ss:$8 sps:$4 sm:$0xff]  }
  0x2e   :  { %v1677_v52 = vld [vmem:[#allocation2 + $0x2d4] ss:$8 sps:$4 sm:$0xff]  }
  0x2f   :  { %854 = vmatpush2.bf16.msra.mxu0 %v1571_v34  ;;  %v1651_v34 = vld [vmem:[#allocation2 + $0x210] ss:$8 sps:$4 sm:$0xff]   ;;  %v1701_v4 = vld [vmem:[#allocation2 + $0x294] ss:$8 sps:$4 sm:$0xff]  }
  0x30   :  { %895 = vmatpush2.bf16.msra.mxu1 %v1572_v35  ;;  %855 = vmatprep.subr.bf16.mxu0 %v1573_v36  ;;  %v46_v35 = vld [vmem:[%s1917_s0 + $0x28] sm:$0xff]  ;;  %v1654_v36 = vld [vmem:[#allocation2 + $0x310] ss:$8 sps:$4 sm:$0xff]   ;;  %v1704_v5 = vld [vmem:[#allocation2 + $0x394] ss:$8 sps:$4 sm:$0xff]  }
  0x31   :  { %896 = vmatprep.subr.bf16.mxu1 %v1575_v37  ;;  %v1659_v37 = vld [vmem:[#allocation2 + $0x204] ss:$8 sps:$4 sm:$0xff]  }
  0x33   :  { %856 = vmatpush2.bf16.msra.mxu0 %v1577_v38  ;;  %v54_v38 = vpack.c.bf16 %v46_v35, %v46_v35  ;;  %v1729_v35 = vld [vmem:[%s1922_s5 + $0x28] sm:$0xff]  }
  0x34   :  { %897 = vmatpush2.bf16.msra.mxu1 %v1578_v39  ;;  %857 = vmatprep.subr.bf16.mxu0 %v1579_v40  ;;  %v48_v39 = vld [vmem:[%s1917_s0 + $0x38] sm:$0xff]  ;;  %v1662_v40 = vld [vmem:[#allocation2 + $0x304] ss:$8 sps:$4 sm:$0xff]  }
  0x35   :  { %898 = vmatprep.subr.bf16.mxu1 %v1581_v41  ;;  %v56_v41 = vpack.c.bf16 %v48_v39, %v48_v39 }
  0x37   :  { %858 = vmatpush2.bf16.msra.mxu0 %v1583_v42  ;;  %v1657_v42 = vld [vmem:[#allocation2 + $0x200] ss:$8 sps:$4 sm:$0xff]  }
  0x38   :  { %899 = vmatpush2.bf16.msra.mxu1 %v1584_v43  ;;  %859 = vmatprep.subr.bf16.mxu0 %v1585_v44  ;;  %v1660_v43 = vld [vmem:[#allocation2 + $0x300] ss:$8 sps:$4 sm:$0xff]   ;;  %v1665_v44 = vld [vmem:[#allocation2 + $0x2f4] ss:$8 sps:$4 sm:$0xff]  }
  0x39   :  { %900 = vmatprep.subr.bf16.mxu1 %v1587_v45  ;;  %v1668_v45 = vld [vmem:[#allocation2 + $0x3f4] ss:$8 sps:$4 sm:$0xff]  }
  0x3b   :  { %860 = vmatpush2.bf16.msra.mxu0 %v1589_v47  ;;  %v1666_v47 = vld [vmem:[#allocation2 + $0x3f0] ss:$8 sps:$4 sm:$0xff]  }
  0x3c   :  { %901 = vmatpush2.bf16.msra.mxu1 %v1590_v48  ;;  %861 = vmatprep.subr.bf16.mxu0 %v1591_v51  ;;  %v1671_v48 = vld [vmem:[#allocation2 + $0x2e4] ss:$8 sps:$4 sm:$0xff]   ;;  %v1672_v51 = vld [vmem:[#allocation2 + $0x3e0] ss:$8 sps:$4 sm:$0xff]  }
  0x3d   :  { %902 = vmatprep.subr.bf16.mxu1 %v1593_v53  ;;  %v1680_v53 = vld [vmem:[#allocation2 + $0x3d4] ss:$8 sps:$4 sm:$0xff]  }
  0x3f   :  { %862 = vmatpush2.bf16.msra.mxu0 %v1595_v54  ;;  %v1675_v54 = vld [vmem:[#allocation2 + $0x2d0] ss:$8 sps:$4 sm:$0xff]  }
  0x40   :  { %903 = vmatpush2.bf16.msra.mxu1 %v1596_v55  ;;  %863 = vmatprep.subr.bf16.mxu0 %v1597_v56  ;;  %v1678_v55 = vld [vmem:[#allocation2 + $0x3d0] ss:$8 sps:$4 sm:$0xff]   ;;  %v1683_v56 = vld [vmem:[#allocation2 + $0x2c4] ss:$8 sps:$4 sm:$0xff]  }
  0x41   :  { %904 = vmatprep.subr.bf16.mxu1 %v1599_v57  ;;  %v1686_v57 = vld [vmem:[#allocation2 + $0x3c4] ss:$8 sps:$4 sm:$0xff]  }
  0x43   :  { %864 = vmatpush2.bf16.msra.mxu0 %v1601_v58  ;;  %v1681_v58 = vld [vmem:[#allocation2 + $0x2c0] ss:$8 sps:$4 sm:$0xff]  }
  0x44   :  { %905 = vmatpush2.bf16.msra.mxu1 %v1602_v59  ;;  %865 = vmatprep.subr.bf16.mxu0 %v1603_v60  ;;  %v1684_v59 = vld [vmem:[#allocation2 + $0x3c0] ss:$8 sps:$4 sm:$0xff]   ;;  %v1689_v60 = vld [vmem:[#allocation2 + $0x2b4] ss:$8 sps:$4 sm:$0xff]  }
  0x45   :  { %906 = vmatprep.subr.bf16.mxu1 %v1605_v61  ;;  %v1692_v61 = vld [vmem:[#allocation2 + $0x3b4] ss:$8 sps:$4 sm:$0xff]  }
  0x47   :  { %866 = vmatpush2.bf16.msra.mxu0 %v1607_v62  ;;  %v1687_v62 = vld [vmem:[#allocation2 + $0x2b0] ss:$8 sps:$4 sm:$0xff]  }
  0x48   :  { %907 = vmatpush2.bf16.msra.mxu1 %v1608_v63  ;;  %867 = vmatprep.subr.bf16.mxu0 %v1609_v0  ;;  %v1690_v63 = vld [vmem:[#allocation2 + $0x3b0] ss:$8 sps:$4 sm:$0xff]   ;;  %v1695_v0 = vld [vmem:[#allocation2 + $0x2a4] ss:$8 sps:$4 sm:$0xff]  }
  0x49   :  { %908 = vmatprep.subr.bf16.mxu1 %v1611_v1  ;;  %v1698_v1 = vld [vmem:[#allocation2 + $0x3a4] ss:$8 sps:$4 sm:$0xff]  }
  0x4b   :  { %868 = vmatpush2.bf16.msra.mxu0 %v1613_v2  ;;  %v1693_v2 = vld [vmem:[#allocation2 + $0x2a0] ss:$8 sps:$4 sm:$0xff]  }
  0x4c   :  { %909 = vmatpush2.bf16.msra.mxu1 %v1614_v3  ;;  %919 = vmatprep.subr.bf16.mxu0 %v1617_v6  ;;  %v1696_v3 = vld [vmem:[#allocation2 + $0x3a0] ss:$8 sps:$4 sm:$0xff]   ;;  %v1699_v6 = vld [vmem:[#allocation2 + $0x290] ss:$8 sps:$4 sm:$0xff]  }
  0x4d   :  { %960 = vmatprep.subr.bf16.mxu1 %v1620_v7  ;;  %v1702_v7 = vld [vmem:[#allocation2 + $0x390] ss:$8 sps:$4 sm:$0xff]  }
  0x4e   :  { %870 = vmatmul.mubr.bf16.vlgmr.msra.gmra.mxu0 %v49_v8  ;;  %v1707_v8 = vld [vmem:[#allocation2 + $0x284] ss:$8 sps:$4 sm:$0xff]  }
  0x4f   :  { %911 = vmatmul.mubr.bf16.vlgmr.msra.gmra.mxu1 %v51_v9  ;;  %920 = vmatpush1.bf16.msra.mxu0 %v1615_v10  ;;  %v1710_v9 = vld [vmem:[#allocation2 + $0x384] ss:$8 sps:$4 sm:$0xff]   ;;  %v1705_v10 = vld [vmem:[#allocation2 + $0x280] ss:$8 sps:$4 sm:$0xff]  }
  0x50   :  { %961 = vmatpush1.bf16.msra.mxu1 %v1618_v11  ;;  %921 = vmatprep.subr.bf16.mxu0 %v1623_v12  ;;  %v1708_v11 = vld [vmem:[#allocation2 + $0x380] ss:$8 sps:$4 sm:$0xff]  }
  0x51   :  { %962 = vmatprep.subr.bf16.mxu1 %v1626_v13  ;;  %951 = vmatprep.mubr.bf16.mxu0 %v54_v38  ;;  %v45_v12 = vld [vmem:[%s1917_s0 + $0x20] sm:$0xff]  ;;  %v47_v13 = vld [vmem:[%s1917_s0 + $0x30] sm:$0xff] }
  0x52   :  { %992 = vmatprep.mubr.bf16.mxu1 %v56_v41 }
  0x53   :  { %922 = vmatpush1.bf16.msra.mxu0 %v1621_v14  ;;  %v53_v14 = vpack.c.bf16 %v45_v12, %v45_v12 }
  0x54   :  { %963 = vmatpush1.bf16.msra.mxu1 %v1624_v15  ;;  %923 = vmatprep.subr.bf16.mxu0 %v1629_v16  ;;  %v55_v15 = vpack.c.bf16 %v47_v13, %v47_v13  ;;  %v1711_v16 = vld [vmem:[%s1920_s3 + $0x78] sm:$0xff]   ;;  %v1437_v13 = vld [vmem:[%s1921_s4] ss:$0 sm:$0xff] }
  0x55   :  { %964 = vmatprep.subr.bf16.mxu1 %v1632_v17  ;;  %v1712_v17 = vld [vmem:[%s1920_s3 + $0x38] sm:$0xff]  }
  0x57   :  { %924 = vmatpush1.bf16.msra.mxu0 %v1627_v18  ;;  %v1713_v18 = vld [vmem:[%s1920_s3 + $0x70] sm:$0xff]  }
  0x58   :  { %965 = vmatpush1.bf16.msra.mxu1 %v1630_v19  ;;  %925 = vmatprep.subr.bf16.mxu0 %v1635_v20  ;;  %v1714_v19 = vld [vmem:[%s1920_s3 + $0x30] sm:$0xff]   ;;  %v1715_v20 = vld [vmem:[%s1920_s3 + $0x68] sm:$0xff]  }
  0x59   :  { %966 = vmatprep.subr.bf16.mxu1 %v1638_v21  ;;  %v1716_v21 = vld [vmem:[%s1920_s3 + $0x28] sm:$0xff]  }
  0x5b   :  { %926 = vmatpush1.bf16.msra.mxu0 %v1633_v22  ;;  %v1717_v22 = vld [vmem:[%s1920_s3 + $0x60] sm:$0xff]  }
  0x5c   :  { %967 = vmatpush1.bf16.msra.mxu1 %v1636_v23  ;;  %927 = vmatprep.subr.bf16.mxu0 %v1641_v24  ;;  %v1718_v23 = vld [vmem:[%s1920_s3 + $0x20] sm:$0xff]   ;;  %v1719_v24 = vld [vmem:[%s1920_s3 + $0x58] sm:$0xff]  }
  0x5d   :  { %968 = vmatprep.subr.bf16.mxu1 %v1644_v25  ;;  %v1720_v25 = vld [vmem:[%s1920_s3 + $0x18] sm:$0xff]  }
  0x5f   :  { %928 = vmatpush1.bf16.msra.mxu0 %v1639_v26  ;;  %v1721_v26 = vld [vmem:[%s1920_s3 + $0x50] sm:$0xff]  }
  0x60   :  { %969 = vmatpush1.bf16.msra.mxu1 %v1642_v27  ;;  %929 = vmatprep.subr.bf16.mxu0 %v1647_v28  ;;  %v1722_v27 = vld [vmem:[%s1920_s3 + $0x10] sm:$0xff]   ;;  %v1723_v28 = vld [vmem:[%s1920_s3 + $0x48] sm:$0xff]  }
  0x61   :  { %970 = vmatprep.subr.bf16.mxu1 %v1650_v29  ;;  %v1724_v29 = vld [vmem:[%s1920_s3 + $0x8] sm:$0xff]  }
  0x63   :  { %930 = vmatpush1.bf16.msra.mxu0 %v1645_v30  ;;  %v1725_v30 = vld [vmem:[%s1920_s3 + $0x40] sm:$0xff]  }
  0x64   :  { %971 = vmatpush1.bf16.msra.mxu1 %v1648_v31  ;;  %931 = vmatprep.subr.bf16.mxu0 %v1653_v32  ;;  %v1726_v31 = vld [vmem:[%s1920_s3] sm:$0xff]   ;;  %v1727_v32 = vld [vmem:[%s1922_s5 + $0x38] sm:$0xff]  }
  0x65   :  { %972 = vmatprep.subr.bf16.mxu1 %v1656_v33  ;;  %v1764_v33 = vmov 0.0  }
  0x67   :  { %932 = vmatpush1.bf16.msra.mxu0 %v1651_v34  ;;  %v1728_v34 = vld [vmem:[%s1922_s5 + $0x30] sm:$0xff]  }
  0x68   :  { %973 = vmatpush1.bf16.msra.mxu1 %v1654_v36  ;;  %933 = vmatprep.subr.bf16.mxu0 %v1659_v37  ;;  %v1730_v36 = vld [vmem:[%s1922_s5 + $0x20] sm:$0xff]   ;;  %v1731_v37 = vld [vmem:[%s1922_s5 + $0x18] sm:$0xff]  }
  0x69   :  { %974 = vmatprep.subr.bf16.mxu1 %v1662_v40 }
  0x6b   :  { %934 = vmatpush1.bf16.msra.mxu0 %v1657_v42 }
  0x6c   :  { %975 = vmatpush1.bf16.msra.mxu1 %v1660_v43  ;;  %935 = vmatprep.subr.bf16.mxu0 %v1665_v44 }
  0x6d   :  { %976 = vmatprep.subr.bf16.mxu1 %v1668_v45 }
  0x6f   :  { %936 = vmatpush2.bf16.msra.mxu0 %v1663_v46  ;;  %v187_v46 = vlaneseq }
  0x70   :  { %977 = vmatpush2.bf16.msra.mxu1 %v1666_v47  ;;  %937 = vmatprep.subr.bf16.mxu0 %v1671_v48 }
  0x71   :  { %978 = vmatprep.subr.bf16.mxu1 %v1674_v49  ;;  %v188_v47 = vshrl.u32 %v187_v46, 7  ;;  %v185_v49 = vld [vmem:[%s1919_s2] sm:$0x3] }
  0x73   :  { %938 = vmatpush2.bf16.msra.mxu0 %v1669_v50  ;;  %v189_v48 = vsub.s32 0, %v188_v47  ;;  %v193_v50 = vsub.s32 1, %v188_v47 }
  0x74   :  { %979 = vmatpush2.bf16.msra.mxu1 %v1672_v51  ;;  %939 = vmatprep.subr.bf16.mxu0 %v1677_v52 }
  0x75   :  { %980 = vmatprep.subr.bf16.mxu1 %v1680_v53  ;;  %v190_v51 = vrot.slane %v185_v49, %v189_v48  ;;  %v194_v52 = vrot.slane %v185_v49, %v193_v50 }
  0x77   :  { %940 = vmatpush2.bf16.msra.mxu0 %v1675_v54 }
  0x78   :  { %981 = vmatpush2.bf16.msra.mxu1 %v1678_v55  ;;  %941 = vmatprep.subr.bf16.mxu0 %v1683_v56 }
  0x79   :  { %982 = vmatprep.subr.bf16.mxu1 %v1686_v57 }
  0x7b   :  { %942 = vmatpush2.bf16.msra.mxu0 %v1681_v58 }
  0x7c   :  { %983 = vmatpush2.bf16.msra.mxu1 %v1684_v59  ;;  %943 = vmatprep.subr.bf16.mxu0 %v1689_v60 }
  0x7d   :  { %984 = vmatprep.subr.bf16.mxu1 %v1692_v61 }
  0x7f   :  { %944 = vmatpush2.bf16.msra.mxu0 %v1687_v62 }
  0x80   :  { %985 = vmatpush2.bf16.msra.mxu1 %v1690_v63  ;;  %945 = vmatprep.subr.bf16.mxu0 %v1695_v0 }
  0x81   :  { %986 = vmatprep.subr.bf16.mxu1 %v1698_v1 }
  0x83   :  { %946 = vmatpush2.bf16.msra.mxu0 %v1693_v2 }
  0x84   :  { %987 = vmatpush2.bf16.msra.mxu1 %v1696_v3  ;;  %947 = vmatprep.subr.bf16.mxu0 %v1701_v4 }
  0x85   :  { %988 = vmatprep.subr.bf16.mxu1 %v1704_v5 }
  0x87   :  { %948 = vmatpush2.bf16.msra.mxu0 %v1699_v6 }
  0x88   :  { %989 = vmatpush2.bf16.msra.mxu1 %v1702_v7  ;;  %949 = vmatprep.subr.bf16.mxu0 %v1707_v8 }
  0x89   :  { %990 = vmatprep.subr.bf16.mxu1 %v1710_v9  ;;  %v1732_v9 = vld [vmem:[%s1922_s5 + $0x10] sm:$0xff]  }
  0x8b   :  { %950 = vmatpush2.bf16.msra.mxu0 %v1705_v10  ;;  %v1733_v10 = vld [vmem:[%s1922_s5 + $0x8] sm:$0xff]  }
  0x8c   :  { %991 = vmatpush2.bf16.msra.mxu1 %v1708_v11  ;;  %1463 = vmatprep.subr.bf16.mxu0 %v1711_v16  ;;  %v1734_v11 = vld [vmem:[%s1922_s5] sm:$0xff]  }
  0x8d   :  { %1494 = vmatprep.subr.bf16.mxu1 %v1764_v33 }
  0x8e   :  { %952 = vmatmul.mubr.bf16.vlgmr.msra.gmra.mxu0 %v53_v14 }
  0x8f   :  { %993 = vmatmul.mubr.bf16.vlgmr.msra.gmra.mxu1 %v55_v15  ;;  %1464 = vmatpush3.bf16.msra.mxu0 %v1712_v17 }
  0x90   :  { %1465 = vmatprep.subr.bf16.mxu0 %v1713_v18  ;;  %1495 = vmatpush3.bf16.msra.mxu1 %v1727_v32 }
  0x91   :  { %1496 = vmatprep.subr.bf16.mxu1 %v1764_v33  ;;  %1510 = vmatprep.mubr.msk.bf16.mxu1 %vm1765_vm0, %v1764_v33 }
  0x93   :  { %1466 = vmatpush3.bf16.msra.mxu0 %v1714_v19 }
  0x94   :  { %1467 = vmatprep.subr.bf16.mxu0 %v1715_v20  ;;  %1497 = vmatpush3.bf16.msra.mxu1 %v1728_v34 }
  0x95   :  { %1498 = vmatprep.subr.bf16.mxu1 %v1764_v33 }
  0x97   :  { %1468 = vmatpush3.bf16.msra.mxu0 %v1716_v21  ;;  %v1454_v21 = vld [vmem:[%s1923_s6] ss:$0 sm:$0xff] }
  0x98   :  { %1469 = vmatprep.subr.bf16.mxu0 %v1717_v22  ;;  %1499 = vmatpush3.bf16.msra.mxu1 %v1729_v35 }
  0x99   :  { %1500 = vmatprep.subr.bf16.mxu1 %v1764_v33 }
  0x9b   :  { %1470 = vmatpush3.bf16.msra.mxu0 %v1718_v23 }
  0x9c   :  { %1471 = vmatprep.subr.bf16.mxu0 %v1719_v24  ;;  %1501 = vmatpush3.bf16.msra.mxu1 %v1730_v36 }
  0x9d   :  { %1502 = vmatprep.subr.bf16.mxu1 %v1764_v33 }
  0x9f   :  { %1472 = vmatpush3.bf16.msra.mxu0 %v1720_v25 }
  0xa0   :  { %1473 = vmatprep.subr.bf16.mxu0 %v1721_v26  ;;  %1503 = vmatpush3.bf16.msra.mxu1 %v1731_v37 }
  0xa1   :  { %1504 = vmatprep.subr.bf16.mxu1 %v1764_v33 }
  0xa3   :  { %1474 = vmatpush3.bf16.msra.mxu0 %v1722_v27 }
  0xa4   :  { %1475 = vmatprep.subr.bf16.mxu0 %v1723_v28  ;;  %1505 = vmatpush3.bf16.msra.mxu1 %v1732_v9 }
  0xa5   :  { %1506 = vmatprep.subr.bf16.mxu1 %v1764_v33 }
  0xa7   :  { %1476 = vmatpush3.bf16.msra.mxu0 %v1724_v29 }
  0xa8   :  { %1477 = vmatprep.subr.bf16.mxu0 %v1725_v30  ;;  %1507 = vmatpush3.bf16.msra.mxu1 %v1733_v10 }
  0xa9   :  { %1508 = vmatprep.subr.bf16.mxu1 %v1764_v33 }
  0xab   :  { %1478 = vmatpush3.bf16.msra.mxu0 %v1726_v31 }
  0xac   :  { %1509 = vmatpush3.bf16.msra.mxu1 %v1734_v11 }
 0x10e   :  { %v871_v38 = vpop.f32.mrf.mxu0 }
 0x10f   :  { %v912_v39 = vpop.f32.mrf.mxu1  ;;  %v872_v53 = vadd.f32 %v871_v38, %v190_v51 }
 0x110   :  { %v873_v40 = vpop.f32.mrf.mxu0 }
 0x111   :  { %v914_v41 = vpop.f32.mrf.mxu1  ;;  %v874_v54 = vadd.f32 %v873_v40, %v194_v52  ;;  %v913_v55 = vadd.f32 %v912_v39, %v872_v53 }
 0x112   :  { %v875_v42 = vpop.f32.mrf.mxu0 }
 0x113   :  { %v916_v43 = vpop.f32.mrf.mxu1  ;;  %v915_v58 = vadd.f32 %v914_v41, %v874_v54 }
 0x114   :  { %v876_v44 = vpop.f32.mrf.mxu0 }
 0x115   :  { %v917_v45 = vpop.f32.mrf.mxu1 }
 0x14e   :  { %v953_v56 = vpop.f32.mrf.mxu0 }
 0x14f   :  { %v994_v57 = vpop.f32.mrf.mxu1  ;;  %v954_v59 = vadd.f32 %v953_v56, %v913_v55 }
 0x150   :  { %v955_v60 = vpop.f32.mrf.mxu0 }
 0x151   :  { %v996_v61 = vpop.f32.mrf.mxu1  ;;  %v995_v62 = vadd.f32 %v994_v57, %v954_v59  ;;  %v956_v63 = vadd.f32 %v955_v60, %v915_v58 }
 0x152   :  { %v957_v0 = vpop.f32.mrf.mxu0 }
 0x153   :  { %v998_v1 = vpop.f32.mrf.mxu1  ;;  %v997_v2 = vadd.f32 %v996_v61, %v956_v63  ;;  %v1001_v3 = vmax.f32 %v995_v62, 0.0 }
 0x154   :  { %v958_v4 = vpop.f32.mrf.mxu0 }
 0x155   :  { %v999_v5 = vpop.f32.mrf.mxu1  ;;  %v1002_v6 = vmax.f32 %v997_v2, 0.0  ;;  %v1003_v8 = vpack.c.bf16 %v1001_v3, %v1001_v3 }
 0x157   :  { %v1004_v7 = vpack.c.bf16 %v1002_v6, %v1002_v6 }
 0x159   :  { %1172 = vmatprep.mubr.bf16.mxu0 %v1004_v7 }
 0x15a   :  { %1173 = vmatmul.mubr.bf16.vlgmr.msra.gmra.mxu0 %v1003_v8 }
 0x21a   :  { %v1479_v12 = vpop.f32.mrf.mxu0 }
 0x21c   :  { %v1480_v14 = vpop.f32.mrf.mxu0 }
 0x21d   :  { %v1481_v15 = vadd.f32 %v1480_v14, %v1479_v12 }
 0x21e   :  { %v1482_v16 = vpop.f32.mrf.mxu0 }
 0x21f   :  { %v1175_v17 = vadd.f32 %v1481_v15, %v1437_v13 }
 0x220   :  { %v1483_v18 = vpop.f32.mrf.mxu0 }
 0x221   :  { %v1180_v19 = vmax.f32 %v1175_v17, 0.0 }
 0x223   :  { %v1181_v20 = vpack.c.bf16 %v1180_v19, %v1180_v19 }
 0x225   :  { %1511 = vmatmul.mubr.bf16.vlgmr.msra.gmra.mxu1 %v1181_v20 }
 0x2e5   :  { %v1287_v22 = vpop.f32.mrf.mxu1 }
 0x2e6   :  { %v1288_v23 = vadd.f32 %v1454_v21, %v1287_v22 }
 0x2e7   :  { %v1512_v24 = vpop.f32.mrf.mxu1 }
 0x2e8   :  { %1293 = vmax.xlane.f32.xlu0 %v1288_v23 }
 0x2e9   :  { %v1290_v25 = vpop.f32.mrf.mxu1 }
 0x2eb   :  { %v1513_v26 = vpop.f32.mrf.mxu1 }
 0x371   :  { %v1294_v27 = vpop.xlane.xlu0 %1293 }
 0x372   :  { %v1295_v28 = vsub.f32 %v1288_v23, %v1294_v27 }
 0x374   :  { %v1296_v29 = vmul.f32 1.442695, %v1295_v28 }
 0x376   :  { %1735 = vpow2.f32 %v1296_v29 }
 0x383   :  { %v1736_v30 = vpop.eup %1735 }
 0x384   :  { %1298 = vadd.xlane.f32.xlu0 %v1736_v30 }
 0x40d   :  { %v1299_v31 = vpop.xlane.xlu0 %1298 }
 0x40e   :  { %1737 = vlog2.f32 %v1299_v31 }
 0x41b   :  { %v1738_v32 = vpop.eup %1737 }
 0x41c   :  { %v1301_v33 = vmul.f32 0.6931472, %v1738_v32 }
 0x41e   :  { %v1302_v34 = vsub.f32 %v1295_v28, %v1301_v33 }
 0x420   :  { %1303 = vst [vmem:[%s1924_s7] sm:$0xff] %v1302_v34 }
 0x421   :  { %1308 = vsyncpa [#allocation3], 1 }

</bundles_post_ra>
